<compile_context>
chip_gen: v7x
topology: tpu7x:2x2x1
jax: 0.10.0
libtpu: 0.0.40
codegen_flags: <defaults>
</compile_context>

<pallas_src>
import functools

import jax
import jax.numpy as jnp
from jax import lax
from jax.experimental import pallas as pl
from jax.experimental.pallas import tpu as pltpu


def _round_up(x, m):
    return (x + m - 1) // m * m


def _keep_mask(shape, seed, salt, row_offset, p):
    """Stateless hash-based Bernoulli(1-p) keep mask (int32 VPU ops only)."""
    rows = lax.broadcasted_iota(jnp.int32, shape, 0) + row_offset
    cols = lax.broadcasted_iota(jnp.int32, shape, 1)
    x = rows * jnp.int32(shape[1]) + cols
    x = x + seed * jnp.int32(0x01000193) + jnp.int32(salt)
    # splitmix32-style mixing (int32 modular arithmetic, logical shifts).
    x = x * jnp.int32(-1640531527)                     # 0x9E3779B9
    x = x ^ lax.shift_right_logical(x, jnp.int32(16))
    x = x * jnp.int32(-2048144789)                     # 0x85EBCA6B
    x = x ^ lax.shift_right_logical(x, jnp.int32(13))
    x = x * jnp.int32(-1028477387)                     # 0xC2B2AE35
    x = x ^ lax.shift_right_logical(x, jnp.int32(16))
    u24 = x & jnp.int32(0x00FFFFFF)                    # uniform in [0, 2^24)
    thresh = jnp.int32(int(p * float(1 << 24)))
    return u24 >= thresh                               # P(keep) = 1 - p


def _prenet_kernel(seed_ref, x_ref, *refs, n_layers, tile_rows, dropout_p,
                   training):
    # seed_ref : (1,) int32 in SMEM (scalar prefetch)
    # x_ref    : (tile_rows, D0p) bf16 input tile (lane-dense, zero padded)
    # refs     : w_0 (D0p, D1p) bf16, b_0 (1, D1p) f32, ..., o_ref (tile_rows, DLp) f32
    o_ref = refs[-1]
    row_off = pl.program_id(0) * tile_rows
    seed = seed_ref[0]

    h = x_ref[...]                                     # bf16, feeds the MXU
    y = None
    for l in range(n_layers):                          # small static unroll
        w = refs[2 * l][...]                           # bf16 (Dinp, Doutp)
        b = refs[2 * l + 1][...]                       # f32  (1, Doutp)
        # Linear: bf16 x bf16 -> f32 accumulation on the MXU.
        y = jnp.dot(h, w, preferred_element_type=jnp.float32)
        y = jnp.maximum(y + b, 0.0)                    # bias + ReLU in f32 (VPU)
        if training and dropout_p > 0.0:
            keep = _keep_mask(y.shape, seed, salt=(l + 1) * 1000003,
                              row_offset=row_off, p=dropout_p)
            scale = jnp.float32(1.0 / (1.0 - dropout_p))
            y = jnp.where(keep, y * scale, jnp.float32(0.0))
        if l + 1 < n_layers:
            h = y.astype(jnp.bfloat16)                 # back to bf16 for next MXU pass
    o_ref[...] = y.astype(o_ref.dtype)


def prenet_forward(x, weights, biases, *, dropout=0.5, training=True, seed=0):
    """Fused PreNet forward.

    Args:
      x:       (B, in_dim) float32.
      weights: list of (out_i, in_i) float32 (nn.Linear weight layout).
      biases:  list of (out_i,) float32.
    Returns:
      (B, out_last) float32.
    """
    assert 0.0 <= float(dropout) < 1.0
    B, in_dim = x.shape
    n_layers = len(weights)
    assert n_layers >= 1 and len(biases) == n_layers
    sizes = [in_dim] + [int(w.shape[0]) for w in weights]

    LANE = 128
    sizes_p = [_round_up(s, LANE) for s in sizes]      # lane-dense feature dims

    # Row tiling: multiple of 8 sublanes, capped so the double-buffered
    # working set stays tiny (well under the v7x 32 MiB scoped VMEM limit).
    tile_rows = min(256, _round_up(max(B, 1), 8))
    B_pad = _round_up(_round_up(B, 8), tile_rows)
    num_tiles = B_pad // tile_rows

    # Glue (tiny, one-off): pad rows/lanes with zeros, transpose weights to
    # (in, out), cast matmul operands to bf16, keep biases in f32.
    x_p = jnp.zeros((B_pad, sizes_p[0]), jnp.bfloat16)
    x_p = x_p.at[:B, :in_dim].set(x.astype(jnp.bfloat16))
    ws_p, bs_p = [], []
    for li in range(n_layers):
        din, dout = sizes[li], sizes[li + 1]
        dinp, doutp = sizes_p[li], sizes_p[li + 1]
        w_t = jnp.transpose(weights[li], (1, 0)).astype(jnp.bfloat16)
        ws_p.append(jnp.zeros((dinp, doutp), jnp.bfloat16).at[:din, :dout].set(w_t))
        bs_p.append(jnp.zeros((1, doutp), jnp.float32)
                    .at[0, :dout].set(biases[li].astype(jnp.float32)))

    seed_arr = jnp.asarray([seed], dtype=jnp.int32)

    kernel = functools.partial(
        _prenet_kernel,
        n_layers=n_layers,
        tile_rows=tile_rows,
        dropout_p=float(dropout),
        training=bool(training),
    )

    # BlockSpecs (index maps receive the scalar-prefetch ref positionally).
    in_specs = [pl.BlockSpec((tile_rows, sizes_p[0]), lambda i, s: (i, 0))]
    for li in range(n_layers):
        dinp, doutp = sizes_p[li], sizes_p[li + 1]
        in_specs.append(pl.BlockSpec((dinp, doutp), lambda i, s: (0, 0)))   # weight (resident)
        in_specs.append(pl.BlockSpec((1, doutp), lambda i, s: (0, 0)))      # bias   (resident)
    out_spec = pl.BlockSpec((tile_rows, sizes_p[-1]), lambda i, s: (i, 0))

    flat_params = [t for pair in zip(ws_p, bs_p) for t in pair]

    out_p = pl.pallas_call(
        kernel,
        out_shape=jax.ShapeDtypeStruct((B_pad, sizes_p[-1]), jnp.float32),
        grid_spec=pltpu.PrefetchScalarGridSpec(
            num_scalar_prefetch=1,
            grid=(num_tiles,),
            in_specs=in_specs,
            out_specs=out_spec,
        ),
        compiler_params=pltpu.CompilerParams(
            dimension_semantics=("parallel",),          # 2-TC sharding on v7x
            vmem_limit_bytes=32 * 1024 * 1024,          # safe on v5e/v6e/v7x
        ),
    )(seed_arr, x_p, *flat_params)

    return out_p[:B, :sizes[-1]]


if __name__ == "__main__":
    key = jax.random.PRNGKey(0)

    # Small shapes consistent with PreNet.forward: x is [B, in_dim].
    B, in_dim = 2, 16
    prenet_layers = [32, 32]
    dropout_p = 0.5

    ks = jax.random.split(key, 1 + 2 * len(prenet_layers))
    x = jax.random.normal(ks[0], (B, in_dim), dtype=jnp.float32)

    # Deterministic nn.Linear-style uniform init.
    sizes = [in_dim] + prenet_layers
    weights, biases = [], []
    for li, (din, dout) in enumerate(zip(sizes[:-1], sizes[1:])):
        bound = 1.0 / float(din) ** 0.5
        w = jax.random.uniform(ks[1 + 2 * li], (dout, din), jnp.float32, -bound, bound)
        b = jax.random.uniform(ks[2 + 2 * li], (dout,), jnp.float32, -bound, bound)
        weights.append(w)
        biases.append(b)

    out = prenet_forward(x, weights, biases, dropout=dropout_p,
                         training=True, seed=0)
    jax.block_until_ready(out)
    assert out.shape == (B, prenet_layers[-1]) and out.dtype == jnp.float32
    assert bool(jnp.all(jnp.isfinite(out)))
    print("KERNEL_OK")
</pallas_src>

<mosaic_0001>
module attributes {stable_mosaic.version = 11 : i64} {
  func.func @_prenet_kernel(%arg0: i32, %arg1: memref<1xi32, #tpu.memory_space<smem>>, %arg2: memref<8x128xbf16, #tpu.memory_space<vmem>>, %arg3: memref<128x128xbf16, #tpu.memory_space<vmem>>, %arg4: memref<1x128xf32, #tpu.memory_space<vmem>>, %arg5: memref<128x128xbf16, #tpu.memory_space<vmem>>, %arg6: memref<1x128xf32, #tpu.memory_space<vmem>>, %arg7: memref<8x128xf32, #tpu.memory_space<vmem>>) attributes {dimension_semantics = [#tpu.dimension_semantics<parallel>], iteration_bounds = array<i64: 1>, scalar_prefetch = 1 : i64, scratch_operands = 0 : i64, tpu.core_type = #tpu.core_type<tc>, window_params = [{transform_indices = @transform_0, window_bounds = array<i64: 8, 128>}, {pipeline_mode = #tpu.pipeline_mode<synchronous>, transform_indices = @transform_1, window_bounds = array<i64: 128, 128>}, {pipeline_mode = #tpu.pipeline_mode<synchronous>, transform_indices = @transform_2, window_bounds = array<i64: 1, 128>}, {pipeline_mode = #tpu.pipeline_mode<synchronous>, transform_indices = @transform_3, window_bounds = array<i64: 128, 128>}, {pipeline_mode = #tpu.pipeline_mode<synchronous>, transform_indices = @transform_4, window_bounds = array<i64: 1, 128>}, {transform_indices = @transform_5, window_bounds = array<i64: 8, 128>}]} {
    %c8_i32 = arith.constant 8 : i32
    %0 = arith.muli %arg0, %c8_i32 : i32
    %c0 = arith.constant 0 : index
    %1 = memref.load %arg1[%c0] : memref<1xi32, #tpu.memory_space<smem>>
    %c0_0 = arith.constant 0 : index
    %c0_1 = arith.constant 0 : index
    %2 = vector.load %arg2[%c0_0, %c0_1] : memref<8x128xbf16, #tpu.memory_space<vmem>>, vector<8x128xbf16>
    %c0_2 = arith.constant 0 : index
    %c0_3 = arith.constant 0 : index
    %3 = vector.load %arg3[%c0_2, %c0_3] : memref<128x128xbf16, #tpu.memory_space<vmem>>, vector<128x128xbf16>
    %c0_4 = arith.constant 0 : index
    %c0_5 = arith.constant 0 : index
    %4 = vector.load %arg4[%c0_4, %c0_5] : memref<1x128xf32, #tpu.memory_space<vmem>>, vector<1x128xf32>
    %cst = arith.constant dense<0.000000e+00> : vector<8x128xf32>
    %5 = tpu.matmul %2, %3, %cst {dimension_numbers = #tpu.dot_dimension_numbers<[1], [0], [0], [1], [0, 0, 1, 1], [], []>} : vector<8x128xbf16>, vector<128x128xbf16>, vector<8x128xf32> -> vector<8x128xf32>
    %6 = vector.broadcast %4 : vector<1x128xf32> to vector<8x128xf32>
    %7 = arith.addf %5, %6 : vector<8x128xf32>
    %cst_6 = arith.constant 0.000000e+00 : f32
    %8 = vector.broadcast %cst_6 : f32 to vector<8x128xf32>
    %9 = arith.maximumf %7, %8 : vector<8x128xf32>
    %10 = tpu.iota {dimensions = array<i32: 0>} : vector<8x128xi32>
    %11 = vector.broadcast %0 : i32 to vector<8x128xi32>
    %12 = arith.addi %10, %11 : vector<8x128xi32>
    %13 = tpu.iota {dimensions = array<i32: 1>} : vector<8x128xi32>
    %c128_i32 = arith.constant 128 : i32
    %14 = vector.broadcast %c128_i32 : i32 to vector<8x128xi32>
    %15 = arith.muli %12, %14 : vector<8x128xi32>
    %16 = arith.addi %15, %13 : vector<8x128xi32>
    %c16777619_i32 = arith.constant 16777619 : i32
    %17 = arith.muli %1, %c16777619_i32 : i32
    %18 = vector.broadcast %17 : i32 to vector<8x128xi32>
    %19 = arith.addi %16, %18 : vector<8x128xi32>
    %c1000003_i32 = arith.constant 1000003 : i32
    %20 = vector.broadcast %c1000003_i32 : i32 to vector<8x128xi32>
    %21 = arith.addi %19, %20 : vector<8x128xi32>
    %c-1640531527_i32 = arith.constant -1640531527 : i32
    %22 = vector.broadcast %c-1640531527_i32 : i32 to vector<8x128xi32>
    %23 = arith.muli %21, %22 : vector<8x128xi32>
    %c16_i32 = arith.constant 16 : i32
    %24 = vector.broadcast %c16_i32 : i32 to vector<8x128xi32>
    %25 = arith.shrui %23, %24 : vector<8x128xi32>
    %26 = arith.xori %23, %25 : vector<8x128xi32>
    %c-2048144789_i32 = arith.constant -2048144789 : i32
    %27 = vector.broadcast %c-2048144789_i32 : i32 to vector<8x128xi32>
    %28 = arith.muli %26, %27 : vector<8x128xi32>
    %c13_i32 = arith.constant 13 : i32
    %29 = vector.broadcast %c13_i32 : i32 to vector<8x128xi32>
    %30 = arith.shrui %28, %29 : vector<8x128xi32>
    %31 = arith.xori %28, %30 : vector<8x128xi32>
    %c-1028477387_i32 = arith.constant -1028477387 : i32
    %32 = vector.broadcast %c-1028477387_i32 : i32 to vector<8x128xi32>
    %33 = arith.muli %31, %32 : vector<8x128xi32>
    %c16_i32_7 = arith.constant 16 : i32
    %34 = vector.broadcast %c16_i32_7 : i32 to vector<8x128xi32>
    %35 = arith.shrui %33, %34 : vector<8x128xi32>
    %36 = arith.xori %33, %35 : vector<8x128xi32>
    %c16777215_i32 = arith.constant 16777215 : i32
    %37 = vector.broadcast %c16777215_i32 : i32 to vector<8x128xi32>
    %38 = arith.andi %36, %37 : vector<8x128xi32>
    %c8388608_i32 = arith.constant 8388608 : i32
    %39 = vector.broadcast %c8388608_i32 : i32 to vector<8x128xi32>
    %40 = arith.cmpi sge, %38, %39 : vector<8x128xi32>
    %cst_8 = arith.constant 2.000000e+00 : f32
    %41 = vector.broadcast %cst_8 : f32 to vector<8x128xf32>
    %42 = arith.mulf %9, %41 : vector<8x128xf32>
    %cst_9 = arith.constant 0.000000e+00 : f32
    %43 = vector.broadcast %cst_9 : f32 to vector<8x128xf32>
    %44 = arith.select %40, %42, %43 : vector<8x128xi1>, vector<8x128xf32>
    %45 = arith.truncf %44 : vector<8x128xf32> to vector<8x128xbf16>
    %c0_10 = arith.constant 0 : index
    %c0_11 = arith.constant 0 : index
    %46 = vector.load %arg5[%c0_10, %c0_11] : memref<128x128xbf16, #tpu.memory_space<vmem>>, vector<128x128xbf16>
    %c0_12 = arith.constant 0 : index
    %c0_13 = arith.constant 0 : index
    %47 = vector.load %arg6[%c0_12, %c0_13] : memref<1x128xf32, #tpu.memory_space<vmem>>, vector<1x128xf32>
    %cst_14 = arith.constant dense<0.000000e+00> : vector<8x128xf32>
    %48 = tpu.matmul %45, %46, %cst_14 {dimension_numbers = #tpu.dot_dimension_numbers<[1], [0], [0], [1], [0, 0, 1, 1], [], []>} : vector<8x128xbf16>, vector<128x128xbf16>, vector<8x128xf32> -> vector<8x128xf32>
    %49 = vector.broadcast %47 : vector<1x128xf32> to vector<8x128xf32>
    %50 = arith.addf %48, %49 : vector<8x128xf32>
    %cst_15 = arith.constant 0.000000e+00 : f32
    %51 = vector.broadcast %cst_15 : f32 to vector<8x128xf32>
    %52 = arith.maximumf %50, %51 : vector<8x128xf32>
    %53 = tpu.iota {dimensions = array<i32: 0>} : vector<8x128xi32>
    %54 = vector.broadcast %0 : i32 to vector<8x128xi32>
    %55 = arith.addi %53, %54 : vector<8x128xi32>
    %56 = tpu.iota {dimensions = array<i32: 1>} : vector<8x128xi32>
    %c128_i32_16 = arith.constant 128 : i32
    %57 = vector.broadcast %c128_i32_16 : i32 to vector<8x128xi32>
    %58 = arith.muli %55, %57 : vector<8x128xi32>
    %59 = arith.addi %58, %56 : vector<8x128xi32>
    %c16777619_i32_17 = arith.constant 16777619 : i32
    %60 = arith.muli %1, %c16777619_i32_17 : i32
    %61 = vector.broadcast %60 : i32 to vector<8x128xi32>
    %62 = arith.addi %59, %61 : vector<8x128xi32>
    %c2000006_i32 = arith.constant 2000006 : i32
    %63 = vector.broadcast %c2000006_i32 : i32 to vector<8x128xi32>
    %64 = arith.addi %62, %63 : vector<8x128xi32>
    %c-1640531527_i32_18 = arith.constant -1640531527 : i32
    %65 = vector.broadcast %c-1640531527_i32_18 : i32 to vector<8x128xi32>
    %66 = arith.muli %64, %65 : vector<8x128xi32>
    %c16_i32_19 = arith.constant 16 : i32
    %67 = vector.broadcast %c16_i32_19 : i32 to vector<8x128xi32>
    %68 = arith.shrui %66, %67 : vector<8x128xi32>
    %69 = arith.xori %66, %68 : vector<8x128xi32>
    %c-2048144789_i32_20 = arith.constant -2048144789 : i32
    %70 = vector.broadcast %c-2048144789_i32_20 : i32 to vector<8x128xi32>
    %71 = arith.muli %69, %70 : vector<8x128xi32>
    %c13_i32_21 = arith.constant 13 : i32
    %72 = vector.broadcast %c13_i32_21 : i32 to vector<8x128xi32>
    %73 = arith.shrui %71, %72 : vector<8x128xi32>
    %74 = arith.xori %71, %73 : vector<8x128xi32>
    %c-1028477387_i32_22 = arith.constant -1028477387 : i32
    %75 = vector.broadcast %c-1028477387_i32_22 : i32 to vector<8x128xi32>
    %76 = arith.muli %74, %75 : vector<8x128xi32>
    %c16_i32_23 = arith.constant 16 : i32
    %77 = vector.broadcast %c16_i32_23 : i32 to vector<8x128xi32>
    %78 = arith.shrui %76, %77 : vector<8x128xi32>
    %79 = arith.xori %76, %78 : vector<8x128xi32>
    %c16777215_i32_24 = arith.constant 16777215 : i32
    %80 = vector.broadcast %c16777215_i32_24 : i32 to vector<8x128xi32>
    %81 = arith.andi %79, %80 : vector<8x128xi32>
    %c8388608_i32_25 = arith.constant 8388608 : i32
    %82 = vector.broadcast %c8388608_i32_25 : i32 to vector<8x128xi32>
    %83 = arith.cmpi sge, %81, %82 : vector<8x128xi32>
    %cst_26 = arith.constant 2.000000e+00 : f32
    %84 = vector.broadcast %cst_26 : f32 to vector<8x128xf32>
    %85 = arith.mulf %52, %84 : vector<8x128xf32>
    %cst_27 = arith.constant 0.000000e+00 : f32
    %86 = vector.broadcast %cst_27 : f32 to vector<8x128xf32>
    %87 = arith.select %83, %85, %86 : vector<8x128xi1>, vector<8x128xf32>
    %c0_28 = arith.constant 0 : index
    %c0_29 = arith.constant 0 : index
    %88 = vector.load %arg7[%c0_28, %c0_29] : memref<8x128xf32, #tpu.memory_space<vmem>>, vector<8x128xf32>
    tpu.vector_store %arg7[%c0_28, %c0_29], %87 {strides = array<i32>} : memref<8x128xf32, #tpu.memory_space<vmem>>, vector<8x128xf32>,
    return
  }
  func.func @transform_0(%arg0: i32, %arg1: memref<1xi32, #tpu.memory_space<smem>>) -> (i32, i32) {
    %c0_i32 = arith.constant 0 : i32
    %c0_i32_0 = arith.constant 0 : i32
    return %arg0, %c0_i32 : i32, i32
  }
  func.func @transform_1(%arg0: i32, %arg1: memref<1xi32, #tpu.memory_space<smem>>) -> (i32, i32) {
    %c0_i32 = arith.constant 0 : i32
    %c0_i32_0 = arith.constant 0 : i32
    %c0_i32_1 = arith.constant 0 : i32
    return %c0_i32, %c0_i32_0 : i32, i32
  }
  func.func @transform_2(%arg0: i32, %arg1: memref<1xi32, #tpu.memory_space<smem>>) -> (i32, i32) {
    %c0_i32 = arith.constant 0 : i32
    %c0_i32_0 = arith.constant 0 : i32
    %c0_i32_1 = arith.constant 0 : i32
    return %c0_i32, %c0_i32_0 : i32, i32
  }
  func.func @transform_3(%arg0: i32, %arg1: memref<1xi32, #tpu.memory_space<smem>>) -> (i32, i32) {
    %c0_i32 = arith.constant 0 : i32
    %c0_i32_0 = arith.constant 0 : i32
    %c0_i32_1 = arith.constant 0 : i32
    return %c0_i32, %c0_i32_0 : i32, i32
  }
  func.func @transform_4(%arg0: i32, %arg1: memref<1xi32, #tpu.memory_space<smem>>) -> (i32, i32) {
    %c0_i32 = arith.constant 0 : i32
    %c0_i32_0 = arith.constant 0 : i32
    %c0_i32_1 = arith.constant 0 : i32
    return %c0_i32, %c0_i32_0 : i32, i32
  }
  func.func @transform_5(%arg0: i32, %arg1: memref<1xi32, #tpu.memory_space<smem>>) -> (i32, i32) {
    %c0_i32 = arith.constant 0 : i32
    %c0_i32_0 = arith.constant 0 : i32
    return %arg0, %c0_i32 : i32, i32
  }
}

</mosaic_0001>

<bundles_post_ra>
// kernel: tpu_custom_call.1
= control target key start
LH: loop header
LB: loop body
LE: loop exit
PB: predicated region body
PF: predicated region fallthrough
CT: control target
= control target key end

     0   :  { %12 = vsyncpa [#allocation5], 0  ;;  %s650_s0 = inlined_call_operand.<no memory space> [shape: s32[1], index: 0, kind: input, shape index: {}]   ;;  %s651_s1 = inlined_call_operand.hbm [shape: bf16[8,128], index: 1, kind: input, shape index: {}]   ;;  %s652_s2 = inlined_call_operand.hbm [shape: bf16[128,128], index: 2, kind: input, shape index: {}]   ;;  %s653_s3 = inlined_call_operand.vmem [shape: f32[1,128], index: 3, kind: input, shape index: {}]   ;;  %s654_s4 = inlined_call_operand.hbm [shape: bf16[128,128], index: 4, kind: input, shape index: {}]   ;;  %s655_s5 = inlined_call_operand.vmem [shape: f32[1,128], index: 5, kind: input, shape index: {}]   ;;  %s656_s6 = inlined_call_operand.hbm [shape: f32[8,128], index: 6, kind: output, shape index: {}]  }
   0x1   :  { %13 = vsyncpa [#allocation8], 0 }
   0x2   :  { %14 = vsyncpa [#allocation6], 0  ;;  %s544_s21 = smov [#allocation7]   ;;  %s450_s25 = scalar_lea.hbm %s652_s2, 1024 }
   0x3   :  { %s30_s22 = sshll.u32 %s544_s21, 4  ;;  %p451_p0 = scmp.ne.s32.totalorder %s652_s2, %s450_s25  ;;  %s31_s22 = int_to_ptr.vmem [resolvable:$true] %s30_s22 }
   0x4   :  { %p454_p1 = scmp.lt.u32.totalorder %s450_s25, %s652_s2 }
   0x6   :  { %p456_p2 = pnand %p454_p1, %p451_p0 }
   0x8   :  { %459 = shalt.err (!%p456_p2)
}
   0x9   :  { %s460_s30 = scalar_lea.vmem %s31_s22, 1024  ;;  %p465_p4 = scmp.lt.s32.totalorder %s31_s22, %s31_s22 }
   0xa   :  { %p461_p3 = scmp.ne.s32.totalorder %s31_s22, %s460_s30  ;;  %p466_p5 = scmp.lt.s32.totalorder %s460_s30, %s460_s30 }
   0xc   :  { %p467_p6 = por %p466_p5, %p465_p4 }
   0xe   :  { %p468_p7 = pnand %p467_p6, %p461_p3 }
  0x10   :  { %471 = shalt.err (!%p468_p7)
}
  0x11   :  { %s545_s7 = smov 64   ;;  %s546_s8 = smov 4  }
  0x12   :  { %36 = dma.hbm_to_vmem [thread:$0]  %s652_s2, 1024, %s31_s22, [#allocation8], %s545_s7, %s545_s7, %s546_s8  }
  0x13   :  { %s547_s11 = smov [#allocation4]   ;;  %s548_s13 = smov [#allocation9]  }
  0x14   :  { %s21_s12 = sshll.u32 %s547_s11, 4  ;;  %s44_s14 = sshll.u32 %s548_s13, 4  ;;  %s22_s12 = int_to_ptr.vmem [resolvable:$true] %s21_s12  ;;  %s45_s14 = int_to_ptr.vmem [resolvable:$true] %s44_s14 }
  0x15   :  { %s472_s17 = scalar_lea.hbm %s651_s1, 64 }
  0x16   :  { %p473_p8 = scmp.ne.s32.totalorder %s651_s1, %s472_s17  ;;  %p476_p9 = scmp.lt.u32.totalorder %s472_s17, %s651_s1 }
  0x18   :  { %p478_p10 = pnand %p476_p9, %p473_p8 }
  0x1a   :  { %481 = shalt.err (!%p478_p10)
}
  0x1b   :  { %s482_s2 = scalar_lea.vmem %s22_s12, 64  ;;  %p487_p12 = scmp.lt.s32.totalorder %s22_s12, %s22_s12 }
  0x1c   :  { %p483_p11 = scmp.ne.s32.totalorder %s22_s12, %s482_s2  ;;  %p488_p13 = scmp.lt.s32.totalorder %s482_s2, %s482_s2 }
  0x1e   :  { %p489_p0 = por %p488_p13, %p487_p12 }
  0x20   :  { %p490_p1 = pnand %p489_p0, %p483_p11 }
  0x22   :  { %493 = shalt.err (!%p490_p1)
}
  0x23   :  { %24 = dma.hbm_to_vmem [thread:$0]  %s651_s1, 64, %s22_s12, [#allocation5]  }
  0x24   :  { %s494_s26 = scalar_lea.hbm %s654_s4, 1024 }
  0x25   :  { %p495_p2 = scmp.ne.s32.totalorder %s654_s4, %s494_s26  ;;  %p498_p3 = scmp.lt.u32.totalorder %s494_s26, %s654_s4 }
  0x27   :  { %p500_p4 = pnand %p498_p3, %p495_p2 }
  0x29   :  { %503 = shalt.err (!%p500_p4)
}
  0x2a   :  { %s504_s9 = scalar_lea.vmem %s45_s14, 1024  ;;  %p509_p6 = scmp.lt.s32.totalorder %s45_s14, %s45_s14 }
  0x2b   :  { %p505_p5 = scmp.ne.s32.totalorder %s45_s14, %s504_s9  ;;  %p510_p7 = scmp.lt.s32.totalorder %s504_s9, %s504_s9 }
  0x2d   :  { %p511_p8 = por %p510_p7, %p509_p6 }
  0x2f   :  { %p512_p9 = pnand %p511_p8, %p505_p5 }
  0x31   :  { %515 = shalt.err (!%p512_p9)
}
  0x32   :  { %50 = dma.hbm_to_vmem [thread:$0]  %s654_s4, 1024, %s45_s14, [#allocation8], %s545_s7, %s545_s7, %s546_s8  }
  0x33   :  { %538 = dma.done.wait [#allocation5], 64  }
  0x34   :  { %539 = vsyncadd [#allocation5], 4294967232 }
  0x35   :  { %540 = dma.done.wait [#allocation8], 2048  }
  0x36   :  { %541 = vsyncadd [#allocation8], 4294965248  ;;  %v549_v0 = vmov 0.0   ;;  %vm550_vm0 = vmmov 0   ;;  %v434_v1 = vld [vmem:[#allocation7] sm:$0xff]   ;;  %v435_v2 = vld [vmem:[#allocation7 + $0x8] sm:$0xff]   ;;  %v178_v18 = vlaneseq }
  0x37   :  { %386 = vmatprep.subr.bf16.mxu0 %v549_v0  ;;  %402 = vmatprep.mubr.msk.bf16.mxu0 %vm550_vm0, %v549_v0  ;;  %v436_v3 = vld [vmem:[#allocation7 + $0x10] sm:$0xff]   ;;  %v442_v4 = vld [vmem:[#allocation9] sm:$0xff]   ;;  %v437_v5 = vld [vmem:[#allocation7 + $0x18] sm:$0xff]   ;;  %s186_s8 = smul.u32 16777619, %s650_s0  ;;  %s551_s13 = smov [#allocation10]  }
  0x38   :  { %406 = vmatprep.subr.bf16.mxu1 %v549_v0  ;;  %422 = vmatprep.mubr.msk.bf16.mxu1 %vm550_vm0, %v549_v0  ;;  %v443_v6 = vld [vmem:[#allocation9 + $0x8] sm:$0xff]   ;;  %v438_v7 = vld [vmem:[#allocation7 + $0x20] sm:$0xff]   ;;  %v444_v8 = vld [vmem:[#allocation9 + $0x10] sm:$0xff]   ;;  %v179_v19 = vshrl.u32 %v178_v18, 7  ;;  %v183_v20 = vand.u32 127, %v178_v18  ;;  %s337_s14 = sshll.u32 %s551_s13, 4  ;;  %s338_s14 = int_to_ptr.vmem [resolvable:$true] %s337_s14 }
  0x39   :  { %387 = vmatpush3.bf16.msra.mxu0 %v434_v1  ;;  %407 = vmatpush3.bf16.msra.mxu1 %v442_v4  ;;  %v439_v9 = vld [vmem:[#allocation7 + $0x28] sm:$0xff]   ;;  %v445_v10 = vld [vmem:[#allocation9 + $0x18] sm:$0xff]   ;;  %v440_v11 = vld [vmem:[#allocation7 + $0x30] sm:$0xff]   ;;  %v187_v23 = vstv %s186_s8  ;;  %s516_s15 = scalar_lea.vmem %s338_s14, 128  ;;  %p521_p11 = scmp.lt.s32.totalorder %s338_s14, %s338_s14 }
  0x3a   :  { %388 = vmatprep.subr.bf16.mxu0 %v549_v0  ;;  %408 = vmatprep.subr.bf16.mxu1 %v549_v0  ;;  %v446_v12 = vld [vmem:[#allocation9 + $0x20] sm:$0xff]   ;;  %v441_v13 = vld [vmem:[#allocation7 + $0x38] sm:$0xff]   ;;  %v447_v14 = vld [vmem:[#allocation9 + $0x28] sm:$0xff]   ;;  %v184_v21 = vmul.u32 128, %v179_v19  ;;  %p517_p10 = scmp.ne.s32.totalorder %s338_s14, %s516_s15  ;;  %p522_p12 = scmp.lt.s32.totalorder %s516_s15, %s516_s15 }
  0x3b   :  { %v65_v15 = vld [vmem:[#allocation4] sm:$0xf]  ;;  %v448_v16 = vld [vmem:[#allocation9 + $0x30] sm:$0xff]  }
  0x3c   :  { %v449_v17 = vld [vmem:[#allocation9 + $0x38] sm:$0xff]   ;;  %v185_v22 = vadd.s32 %v184_v21, %v183_v20  ;;  %p523_p13 = por %p522_p12, %p521_p11 }
  0x3d   :  { %389 = vmatpush3.bf16.msra.mxu0 %v435_v2  ;;  %409 = vmatpush3.bf16.msra.mxu1 %v443_v6  ;;  %v347_v35 = vld [vmem:[%s653_s3] ss:$0 sm:$0xff] }
  0x3e   :  { %390 = vmatprep.subr.bf16.mxu0 %v549_v0  ;;  %410 = vmatprep.subr.bf16.mxu1 %v549_v0  ;;  %v188_v24 = vadd.s32 %v187_v23, %v185_v22  ;;  %v356_v55 = vld [vmem:[%s655_s5] ss:$0 sm:$0xff]  ;;  %p524_p0 = pnand %p523_p13, %p517_p10 }
  0x40   :  { %v189_v25 = vadd.s32 1000003, %v188_v24  ;;  %v316_v45 = vadd.s32 2000006, %v188_v24 }
  0x41   :  { %391 = vmatpush3.bf16.msra.mxu0 %v436_v3  ;;  %411 = vmatpush3.bf16.msra.mxu1 %v444_v8 }
  0x42   :  { %392 = vmatprep.subr.bf16.mxu0 %v549_v0  ;;  %412 = vmatprep.subr.bf16.mxu1 %v549_v0  ;;  %v190_v26 = vmul.u32 2654435769, %v189_v25  ;;  %v317_v46 = vmul.u32 2654435769, %v316_v45 }
  0x44   :  { %v191_v27 = vshrl.u32 %v190_v26, 16  ;;  %v318_v47 = vshrl.u32 %v317_v46, 16 }
  0x45   :  { %393 = vmatpush3.bf16.msra.mxu0 %v437_v5  ;;  %413 = vmatpush3.bf16.msra.mxu1 %v445_v10 }
  0x46   :  { %394 = vmatprep.subr.bf16.mxu0 %v549_v0  ;;  %414 = vmatprep.subr.bf16.mxu1 %v549_v0  ;;  %v192_v28 = vxor.u32 %v191_v27, %v190_v26  ;;  %v319_v48 = vxor.u32 %v318_v47, %v317_v46 }
  0x48   :  { %v193_v29 = vmul.u32 2246822507, %v192_v28  ;;  %v320_v49 = vmul.u32 2246822507, %v319_v48 }
  0x49   :  { %395 = vmatpush3.bf16.msra.mxu0 %v438_v7  ;;  %415 = vmatpush3.bf16.msra.mxu1 %v446_v12 }
  0x4a   :  { %396 = vmatprep.subr.bf16.mxu0 %v549_v0  ;;  %416 = vmatprep.subr.bf16.mxu1 %v549_v0  ;;  %v194_v30 = vshrl.u32 %v193_v29, 13  ;;  %v321_v50 = vshrl.u32 %v320_v49, 13 }
  0x4c   :  { %v195_v31 = vxor.u32 %v194_v30, %v193_v29  ;;  %v322_v51 = vxor.u32 %v321_v50, %v320_v49 }
  0x4d   :  { %397 = vmatpush3.bf16.msra.mxu0 %v439_v9  ;;  %417 = vmatpush3.bf16.msra.mxu1 %v447_v14 }
  0x4e   :  { %398 = vmatprep.subr.bf16.mxu0 %v549_v0  ;;  %418 = vmatprep.subr.bf16.mxu1 %v549_v0  ;;  %v196_v32 = vmul.u32 3266489909, %v195_v31  ;;  %v323_v52 = vmul.u32 3266489909, %v322_v51 }
  0x50   :  { %v197_v33 = vshrl.u32 %v196_v32, 16  ;;  %v324_v53 = vshrl.u32 %v323_v52, 16 }
  0x51   :  { %399 = vmatpush3.bf16.msra.mxu0 %v440_v11  ;;  %419 = vmatpush3.bf16.msra.mxu1 %v448_v16 }
  0x52   :  { %400 = vmatprep.subr.bf16.mxu0 %v549_v0  ;;  %420 = vmatprep.subr.bf16.mxu1 %v549_v0  ;;  %v198_v34 = vxor.u32 %v197_v33, %v196_v32  ;;  %v325_v54 = vxor.u32 %v324_v53, %v323_v52 }
  0x54   :  { %v199_v36 = vand.u32 16777215, %v198_v34  ;;  %v326_v57 = vand.u32 16777215, %v325_v54 }
  0x55   :  { %401 = vmatpush3.bf16.msra.mxu0 %v441_v13  ;;  %421 = vmatpush3.bf16.msra.mxu1 %v449_v17 }
  0x56   :  { %vm200_vm1 = vcmp.ge.s32.totalorder %v199_v36, 8388608  ;;  %vm327_vm3 = vcmp.ge.s32.totalorder %v326_v57, 8388608 }
  0x57   :  { %vm365_vm2 = vmpackc.low %vm200_vm1, %vm200_vm1 }
  0x58   :  { %403 = vmatmul.mubr.bf16.vlgmr.msra.gmra.mrb[0].mxu0 %v65_v15 }
 0x12b   :  { %v171_v37 = vpop.f32.mrb[0].mxu0 }
 0x12c   :  { %v172_v38 = vadd.f32 %v347_v35, %v171_v37  ;;  %v404_v39 = vpop.f32.mrb[1].mxu0 }
 0x12d   :  { %v174_v40 = vpop.f32.mrb[2].mxu0 }
 0x12e   :  { %v177_v41 = vmax.f32 %v172_v38, 0.0  ;;  %v405_v42 = vpop.f32.mrb[3].mxu0 }
 0x130   :  { %v201_v43 = vmul.f32 2.0, %v177_v41 }
 0x132   :  { %v366_v44 = vpack.c.bf16 %v201_v43, %v201_v43 }
 0x134   :  { %423 = vmatmul.mubr.msk.bf16.vlgmr.msra.gmra.mrb[0].mxu1 %vm365_vm2, %v366_v44 }
 0x207   :  { %v309_v56 = vpop.f32.mrb[0].mxu1 }
 0x208   :  { %v310_v58 = vadd.f32 %v356_v55, %v309_v56  ;;  %v424_v59 = vpop.f32.mrb[1].mxu1 }
 0x209   :  { %v312_v60 = vpop.f32.mrb[2].mxu1 }
 0x20a   :  { %v315_v61 = vmax.f32 %v310_v58, 0.0  ;;  %v425_v62 = vpop.f32.mrb[3].mxu1 }
 0x20c   :  { %v328_v63 = vmul.f32 2.0, %v315_v61 }
 0x20e   :  { %v329_v0 = vsel %vm327_vm3, %v328_v63, 0.0 }
 0x20f   :  { %330 = vst [vmem:[#allocation10] sm:$0xff] %v329_v0 }
 0x210   :  { %527 = shalt.err (!%p524_p0)
}
 0x211   :  { %s528_s17 = scalar_lea.hbm %s656_s6, 128 }
 0x212   :  { %p529_p1 = scmp.ne.s32.totalorder %s656_s6, %s528_s17  ;;  %p532_p2 = scmp.lt.u32.totalorder %s528_s17, %s656_s6 }
 0x214   :  { %p534_p3 = pnand %p532_p2, %p529_p1 }
 0x216   :  { %537 = shalt.err (!%p534_p3)
}
 0x217   :  { %340 = dma.vmem_to_hbm [thread:$0]  %s338_s14, 128, %s656_s6, [#allocation6]  }
 0x218   :  { %542 = dma.done.wait [#allocation6], 128  }
 0x219   :  { %543 = vsyncadd [#allocation6], 4294967168 }
 0x21a   :  { %344 = vsyncpa [#allocation5], 1 }
 0x21b   :  { %345 = vsyncpa [#allocation8], 1 }
 0x21c   :  { %346 = vsyncpa [#allocation6], 1 }

</bundles_post_ra>
